<compile_context>
chip_gen: v7x
topology: tpu7x:2x2x1
jax: 0.10.0
libtpu: 0.0.40
codegen_flags: <defaults>
</compile_context>

<pallas_src>
import functools

import jax
import jax.numpy as jnp
from jax.experimental import pallas as pl
from jax.experimental.pallas import tpu as pltpu

EPS = 1e-5

_VMEM_SPEC = functools.partial(pl.BlockSpec, memory_space=pltpu.MemorySpace.VMEM)


# ---------------------------------------------------------------------------
# One-time hardening probe for the roll convention
# ---------------------------------------------------------------------------
def _probe_roll_shift_sign() -> int:
    """pltpu.roll is documented to match jnp.roll (positive shift moves elements
    toward higher indices).  Verify that once on the device and return the sign
    to apply to a "read value at index i + offset" tap shift, so a convention
    flip can never silently corrupt the 3x3 conv.  Must run OUTSIDE jit."""
    def kernel(x_ref, o_ref):
        o_ref[...] = pltpu.roll(x_ref[...], 1, 1)

    x = jax.lax.broadcasted_iota(jnp.float32, (8, 128), 1)
    out = pl.pallas_call(
        kernel,
        out_shape=jax.ShapeDtypeStruct((8, 128), jnp.float32),
        in_specs=[_VMEM_SPEC()],
        out_specs=_VMEM_SPEC(),
    )(x)
    first = float(out[0, 0])
    if first == 127.0:      # jnp.roll convention: out[i] = x[i - shift]
        return -1
    if first == 1.0:        # flipped convention:  out[i] = x[i + shift]
        return 1
    raise RuntimeError(f"unexpected pltpu.roll semantics (out[0, 0] = {first})")


# ---------------------------------------------------------------------------
# Fused resBlock kernel
# ---------------------------------------------------------------------------
def res_block_kernel(x_ref, w1_ref, w2_ref, w3_ref, wd_ref, o_ref,
                     *, H, W, roll_sign):
    # x_ref : (N, Cin,  HW)   NCHW activations, H*W flattened on lanes (the
    #                         reshape on both sides of the call is free).
    # w1_ref: (Cmid, Cin)     1x1 conv1
    # w2_ref: (9, Cmid, Cmid) 3x3 conv2, tap-major (kh*3 + kw)
    # w3_ref: (Cexp, Cmid)    1x1 conv3
    # wd_ref: (Cexp, Cin)     1x1 downsample conv
    # o_ref : (N, Cexp, HW)
    #
    # The tiny batch dim is statically unrolled (all compute stays 2-D,
    # channels on sublanes, spatial on lanes); BN statistics still span the
    # whole batch.
    N = x_ref.shape[0]
    HW = x_ref.shape[2]
    inv_count = 1.0 / float(N * HW)

    def bn(ys):
        # BatchNorm2d, training mode, weight=1 / bias=0: per-channel stats over
        # all N*H*W positions, biased variance, eps=1e-5.  Two-pass variance
        # (matches PyTorch; no cancellation).  Lane reductions hit the XLU; the
        # batch reduction is a static unrolled add of tiny (C, 1) columns.
        mean = sum(jnp.sum(y, axis=1, keepdims=True) for y in ys) * inv_count
        ds = [y - mean for y in ys]
        var = sum(jnp.sum(d * d, axis=1, keepdims=True) for d in ds) * inv_count
        inv_std = jax.lax.rsqrt(var + EPS)
        return [d * inv_std for d in ds]

    xs = [x_ref[n] for n in range(N)]            # per-image (Cin, HW) views

    # ---- conv1 (1x1) + bn1 --------------------------------------------------
    y1 = bn([jnp.dot(w1_ref[...], x, preferred_element_type=jnp.float32)
             for x in xs])

    # Boundary-validity vectors, hoisted out of the 9-tap loop and built from a
    # single in-kernel iota (no hw input / DMA).
    pos = jax.lax.broadcasted_iota(jnp.int32, (1, HW), 1)
    hh = pos // W
    ww = pos % W
    h_ok = [jnp.logical_and(hh + d >= 0, hh + d < H) for d in (-1, 0, 1)]
    w_ok = [jnp.logical_and(ww + d >= 0, ww + d < W) for d in (-1, 0, 1)]

    # ---- conv2 (3x3, stride=1, pad=1) + bn2 ---------------------------------
    # Nine shifted taps taken directly from the in-register y1 via XLU lane
    # rotates; wrap-around lanes are exactly the masked (zero-padding) lanes.
    # TODO(synk): at real channel counts, fuse the 9 taps into one K=9*Cmid
    # matmul (sublane-stacked operand) and cast matmul operands to bf16.
    acc = [jnp.zeros_like(y) for y in y1]
    for kh in range(3):
        for kw in range(3):
            offset = (kh - 1) * W + (kw - 1)     # flat lane offset of the tap
            w_tap = w2_ref[kh * 3 + kw]          # (Cmid, Cmid)
            if offset == 0:
                taps = y1                        # centre tap: always valid
            else:
                valid = jnp.logical_and(h_ok[kh], w_ok[kw])     # (1, HW)
                lane_shift = (roll_sign * offset) % HW          # static, >= 0
                taps = [jnp.where(valid, pltpu.roll(y, lane_shift, 1), 0.0)
                        for y in y1]
            acc = [a + jnp.dot(w_tap, t, preferred_element_type=jnp.float32)
                   for a, t in zip(acc, taps)]
    y2 = bn(acc)

    # ---- conv3 (1x1) + bn3, downsample (1x1) + bn, residual add, relu -------
    y3 = bn([jnp.dot(w3_ref[...], y, preferred_element_type=jnp.float32)
             for y in y2])
    rs = bn([jnp.dot(wd_ref[...], x, preferred_element_type=jnp.float32)
             for x in xs])
    for n in range(N):
        o_ref[n] = jnp.maximum(y3[n] + rs[n], 0.0)


# ---------------------------------------------------------------------------
# resBlock forward (stride=1, is_downsample=True)
# ---------------------------------------------------------------------------
def res_block_forward(x_nchw, params, *, roll_sign=-1):
    w1, w2, w3, wd = params                      # PyTorch conv layouts (O, I, kh, kw)
    N, Cin, H, W = x_nchw.shape
    HW = H * W
    Cexp = w3.shape[0]

    # Free, metadata-only reshape: NCHW stays put in HBM, H*W lands on lanes.
    x = x_nchw.reshape(N, Cin, HW)

    # Tiny weight prep (constant-folded by XLA; no activation-sized transposes).
    w1m = w1[:, :, 0, 0]                                             # (Cmid, Cin)
    w2r = jnp.transpose(w2, (2, 3, 0, 1)).reshape(9, w2.shape[0], w2.shape[1])
    w3m = w3[:, :, 0, 0]                                             # (Cexp, Cmid)
    wdm = wd[:, :, 0, 0]                                             # (Cexp, Cin)

    out = pl.pallas_call(
        functools.partial(res_block_kernel, H=H, W=W, roll_sign=roll_sign),
        out_shape=jax.ShapeDtypeStruct((N, Cexp, HW), jnp.float32),
        in_specs=[_VMEM_SPEC()] * 5,
        out_specs=_VMEM_SPEC(),
        compiler_params=pltpu.CompilerParams(vmem_limit_bytes=32 * 1024 * 1024),
    )(x, w1m, w2r, w3m, wdm)

    # TODO(synk): at production shapes, grid over (N, H*W) tiles with a
    # two-phase BN (per-tile sum/sumsq accumulators finalized under pl.when on
    # the last step), mark the spatial axis "parallel" (v7x megacore) with the
    # tile sized for its 64 MiB VMEM, fuse the 9 conv2 taps into one K=9*Cmid
    # matmul, and cast matmul operands to bf16 (kept f32 here to hold the
    # 1e-3 check at these tiny contraction sizes).
    return out.reshape(N, Cexp, H, W)            # already NCHW: no transpose


# ---------------------------------------------------------------------------
# Parameter init (xavier_uniform, deterministic) and pure-JAX reference
# ---------------------------------------------------------------------------
def xavier_uniform(key, shape):
    out_c, in_c, kh, kw = shape
    fan_in = in_c * kh * kw
    fan_out = out_c * kh * kw
    bound = (6.0 / (fan_in + fan_out)) ** 0.5
    return jax.random.uniform(key, shape, jnp.float32, -bound, bound)


def ref_forward(x, params):
    w1, w2, w3, wd = params

    def conv(x, w, pad=0):
        return jax.lax.conv_general_dilated(
            x, w, (1, 1), [(pad, pad), (pad, pad)],
            dimension_numbers=("NCHW", "OIHW", "NCHW"))

    def bn(x):
        mean = jnp.mean(x, axis=(0, 2, 3), keepdims=True)
        var = jnp.mean((x - mean) ** 2, axis=(0, 2, 3), keepdims=True)
        return (x - mean) * jax.lax.rsqrt(var + EPS)

    y = bn(conv(x, w1))
    y = bn(conv(y, w2, pad=1))
    y = bn(conv(y, w3))
    res = bn(conv(x, wd))
    return jax.nn.relu(y + res)


if __name__ == "__main__":
    in_channels, out_channels, expansion = 4, 4, 4
    N, H, W = 2, 16, 16

    key = jax.random.PRNGKey(0)
    kx, k1, k2, k3, kd = jax.random.split(key, 5)
    x = jax.random.normal(kx, (N, in_channels, H, W), jnp.float32)

    params = (
        xavier_uniform(k1, (out_channels, in_channels, 1, 1)),                 # conv1
        xavier_uniform(k2, (out_channels, out_channels, 3, 3)),                # conv2
        xavier_uniform(k3, (out_channels * expansion, out_channels, 1, 1)),    # conv3
        xavier_uniform(kd, (out_channels * expansion, in_channels, 1, 1)),     # downsample
    )

    # Resolve the roll convention once, outside jit (static Python int).
    roll_sign = _probe_roll_shift_sign()

    fwd = jax.jit(functools.partial(res_block_forward, roll_sign=roll_sign))
    out = jax.block_until_ready(fwd(x, params))
    assert out.shape == (N, out_channels * expansion, H, W)

    ref = jax.block_until_ready(ref_forward(x, params))
    assert jnp.allclose(out, ref, atol=1e-3, rtol=1e-3), "mismatch vs reference"

    print("KERNEL_OK")
</pallas_src>

<mosaic_0001>
module attributes {stable_mosaic.version = 11 : i64} {
  func.func @kernel(%arg0: memref<8x128xf32, #tpu.memory_space<vmem>>, %arg1: memref<8x128xf32, #tpu.memory_space<vmem>>) attributes {dimension_semantics = [], scalar_prefetch = 0 : i64, scratch_operands = 0 : i64, tpu.core_type = #tpu.core_type<tc>} {
    %c0 = arith.constant 0 : index
    %c0_0 = arith.constant 0 : index
    %0 = vector.load %arg0[%c0, %c0_0] : memref<8x128xf32, #tpu.memory_space<vmem>>, vector<8x128xf32>
    %c1_i32 = arith.constant 1 : i32
    %1 = tpu.dynamic_rotate %0 by %c1_i32 dim 1 : vector<8x128xf32>, i32 -> vector<8x128xf32>
    %c0_1 = arith.constant 0 : index
    %c0_2 = arith.constant 0 : index
    %2 = vector.load %arg1[%c0_1, %c0_2] : memref<8x128xf32, #tpu.memory_space<vmem>>, vector<8x128xf32>
    tpu.vector_store %arg1[%c0_1, %c0_2], %1 {strides = array<i32>} : memref<8x128xf32, #tpu.memory_space<vmem>>, vector<8x128xf32>,
    return
  }
}

</mosaic_0001>

<bundles_post_ra>
// kernel: tpu_custom_call.1
= control target key start
LH: loop header
LB: loop body
LE: loop exit
PB: predicated region body
PF: predicated region fallthrough
CT: control target
= control target key end

     0   :  { %6 = vsyncpa [#allocation3], 0  ;;  %s128_s0 = inlined_call_operand.hbm [shape: f32[8,128], index: 0, kind: input, shape index: {}]   ;;  %s129_s1 = inlined_call_operand.hbm [shape: f32[8,128], index: 1, kind: output, shape index: {}]  }
   0x1   :  { %7 = vsyncpa [#allocation4], 0  ;;  %s91_s6 = smov [#allocation2]   ;;  %s43_s10 = scalar_lea.hbm %s128_s0, 128 }
   0x2   :  { %s14_s7 = sshll.u32 %s91_s6, 4  ;;  %p44_p0 = scmp.ne.s32.totalorder %s128_s0, %s43_s10  ;;  %s15_s7 = int_to_ptr.vmem [resolvable:$true] %s14_s7 }
   0x3   :  { %p47_p1 = scmp.lt.u32.totalorder %s43_s10, %s128_s0 }
   0x5   :  { %p49_p2 = pnand %p47_p1, %p44_p0 }
   0x7   :  { %52 = shalt.err (!%p49_p2)
}
   0x8   :  { %s53_s15 = scalar_lea.vmem %s15_s7, 128  ;;  %p58_p4 = scmp.lt.s32.totalorder %s15_s7, %s15_s7 }
   0x9   :  { %p54_p3 = scmp.ne.s32.totalorder %s15_s7, %s53_s15  ;;  %p59_p5 = scmp.lt.s32.totalorder %s53_s15, %s53_s15 }
   0xb   :  { %p60_p6 = por %p59_p5, %p58_p4 }
   0xd   :  { %p61_p7 = pnand %p60_p6, %p54_p3 }
   0xf   :  { %64 = shalt.err (!%p61_p7)
}
  0x10   :  { %17 = dma.hbm_to_vmem [thread:$0]  %s128_s0, 128, %s15_s7, [#allocation3]  }
  0x11   :  { %87 = dma.done.wait [#allocation3], 128  }
  0x12   :  { %88 = vsyncadd [#allocation3], 4294967168  ;;  %v21_v0 = vld [vmem:[#allocation2] sm:$0xff]  ;;  %s92_s18 = smov 1   ;;  %s93_s19 = smov [#allocation5]  }
  0x13   :  { %22 = vrot.lane.b32.xlu0 %v21_v0, %s92_s18  ;;  %s31_s20 = sshll.u32 %s93_s19, 4  ;;  %s32_s20 = int_to_ptr.vmem [resolvable:$true] %s31_s20 }
  0x14   :  { %s65_s21 = scalar_lea.vmem %s32_s20, 128  ;;  %p70_p9 = scmp.lt.s32.totalorder %s32_s20, %s32_s20 }
  0x15   :  { %p66_p8 = scmp.ne.s32.totalorder %s32_s20, %s65_s21  ;;  %p71_p10 = scmp.lt.s32.totalorder %s65_s21, %s65_s21 }
  0x17   :  { %p72_p11 = por %p71_p10, %p70_p9 }
  0x19   :  { %p73_p12 = pnand %p72_p11, %p66_p8 }
  0x85   :  { %v23_v1 = vpop.permute.xlu0 %22 }
  0x86   :  { %24 = vst [vmem:[#allocation5] sm:$0xff] %v23_v1 }
  0x87   :  { %76 = shalt.err (!%p73_p12)
}
  0x88   :  { %s77_s0 = scalar_lea.hbm %s129_s1, 128 }
  0x89   :  { %p78_p13 = scmp.ne.s32.totalorder %s129_s1, %s77_s0  ;;  %p81_p0 = scmp.lt.u32.totalorder %s77_s0, %s129_s1 }
  0x8b   :  { %p83_p1 = pnand %p81_p0, %p78_p13 }
  0x8d   :  { %86 = shalt.err (!%p83_p1)
}
  0x8e   :  { %34 = dma.vmem_to_hbm [thread:$0]  %s32_s20, 128, %s129_s1, [#allocation4]  }
  0x8f   :  { %89 = dma.done.wait [#allocation4], 128  }
  0x90   :  { %90 = vsyncadd [#allocation4], 4294967168 }
  0x91   :  { %38 = vsyncpa [#allocation3], 1 }
  0x92   :  { %39 = vsyncpa [#allocation4], 1 }

</bundles_post_ra>
